<compile_context>
chip_gen: v6e
topology: v6e:2x2x1
jax: 0.10.0
libtpu: 0.0.40
codegen_flags: <defaults>
</compile_context>

<pallas_src>
import functools

import jax
import jax.numpy as jnp
from jax.experimental import pallas as pl
from jax.experimental.pallas import tpu as pltpu


# ----------------------------------------------------------------------------- helpers

def _round_up(n, m):
    return ((n + m - 1) // m) * m


def _pad2d(a, rows, cols, dtype):
    out = jnp.zeros((rows, cols), dtype)
    return out.at[: a.shape[0], : a.shape[1]].set(a.astype(dtype))


@functools.lru_cache(maxsize=1)
def _vmem_budget_bytes():
    """Per-generation scoped-VMEM budget: ~3/4 of physical VMEM, capped at 100 MiB.

    128 MiB parts (v5e/v6e) -> 96 MiB; 64 MiB parts (v7x) -> 48 MiB.
    """
    try:
        cap = int(pltpu.get_tpu_info().vmem_capacity_bytes)
    except Exception:  # narrow fallback only if the hardware query is unavailable
        cap = 64 * 1024 * 1024
    return min((cap * 3) // 4, 100 * 1024 * 1024)


@functools.lru_cache(maxsize=1)
def _single_buffer_supported():
    """Capability probe (not a fallback around the real kernel): can constant-index
    blocks be single-buffered via pipeline_mode=pl.Buffered(1)?"""
    if not hasattr(pl, "Buffered"):
        return False

    def _probe(a_ref, o_ref):
        o_ref[...] = a_ref[...] * 2.0

    try:
        a = jnp.zeros((8, 128), jnp.float32)
        pl.pallas_call(
            _probe,
            out_shape=jax.ShapeDtypeStruct((8, 128), jnp.float32),
            grid=(1,),
            in_specs=[pl.BlockSpec((8, 128), lambda i: (0, 0),
                                   pipeline_mode=pl.Buffered(1))],
            out_specs=pl.BlockSpec((8, 128), lambda i: (0, 0)),
        )(a).block_until_ready()
        return True
    except Exception:
        return False


def _const_spec(shape, grid_rank, pipeline_mode):
    """BlockSpec whose block index never changes across the grid (weights / BN params)."""
    idx = (lambda i: (0, 0)) if grid_rank == 1 else (lambda i, k: (0, 0))
    if pipeline_mode is None:
        return pl.BlockSpec(shape, idx)
    return pl.BlockSpec(shape, idx, pipeline_mode=pipeline_mode)


def _choose_batch_tile(B, max_tile):
    """Pick a batch tile (multiple of 16 for bf16 sublane packing) that minimizes padding
    waste, then split so the parallel batch axis has >=2 blocks (v7x has 2 TensorCores)."""
    max_tile = max(16, _round_up(min(max_tile, max(B, 16)), 16))
    cands = [t for t in (512, 384, 320, 256, 192, 160, 128, 96, 64, 48, 32, 16)
             if t <= max_tile]
    bt = min(cands, key=lambda t: (_round_up(B, t) - B, -t))
    if B > 16 and _round_up(B, bt) // bt < 2:
        bt = max(16, _round_up((B + 1) // 2, 16))
    return bt


# ----------------------------------------------------------------------------- kernels

def _mlp_resident_kernel(x_ref, w1_ref, s1_ref, t1_ref,
                         w2_ref, s2_ref, t2_ref,
                         w3_ref, b3_ref, o_ref):
    """Weight-resident variant: grid over batch tiles only; all weights live in VMEM."""
    # fc1 (bf16 x bf16 -> f32) + folded bn1 (+bias) + relu   (dropout: identity in eval mode)
    h = jnp.dot(x_ref[...], w1_ref[...], preferred_element_type=jnp.float32)
    h = jnp.maximum(h * s1_ref[...] + t1_ref[...], 0.0)
    # fc2 + folded bn2 (+bias) + relu                        (dropout: identity in eval mode)
    h = jnp.dot(h.astype(jnp.bfloat16), w2_ref[...], preferred_element_type=jnp.float32)
    h = jnp.maximum(h * s2_ref[...] + t2_ref[...], 0.0)
    # fc3 + bias
    out = jnp.dot(h.astype(jnp.bfloat16), w3_ref[...],
                  preferred_element_type=jnp.float32) + b3_ref[...]
    o_ref[...] = out.astype(o_ref.dtype)


def _mlp_ktiled_kernel(x_ref, w1_ref, s1_ref, t1_ref,
                       w2_ref, s2_ref, t2_ref,
                       w3_ref, b3_ref, o_ref, acc_ref):
    """K-tiled fallback: fc1 reduced over grid axis 1 into an f32 VMEM accumulator."""
    k = pl.program_id(1)

    @pl.when(k == 0)
    def _():
        acc_ref[...] = jnp.zeros_like(acc_ref)

    acc_ref[...] += jnp.dot(x_ref[...], w1_ref[...], preferred_element_type=jnp.float32)

    @pl.when(k == pl.num_programs(1) - 1)
    def _():
        h = jnp.maximum(acc_ref[...] * s1_ref[...] + t1_ref[...], 0.0)
        h = jnp.dot(h.astype(jnp.bfloat16), w2_ref[...], preferred_element_type=jnp.float32)
        h = jnp.maximum(h * s2_ref[...] + t2_ref[...], 0.0)
        out = jnp.dot(h.astype(jnp.bfloat16), w3_ref[...],
                      preferred_element_type=jnp.float32) + b3_ref[...]
        o_ref[...] = out.astype(o_ref.dtype)


# ----------------------------------------------------------------------------- wrapper

def prepare_params(params, *, k_tile=1024):
    """One-time pad/cast of the weights (hoisted out of the per-call path).

    Returns a dict of lane-padded bf16 weights + f32 folded-BN params plus padded dims.
    """
    input_dim, hidden_dim = params["w1"].shape
    output_dim = params["w3"].shape[1]

    H = _round_up(hidden_dim, 128)
    O = _round_up(output_dim, 128)
    tk = min(k_tile, _round_up(input_dim, 128))
    K = _round_up(input_dim, tk)

    return {
        "w1": _pad2d(params["w1"], K, H, jnp.bfloat16),
        "w2": _pad2d(params["w2"], H, H, jnp.bfloat16),
        "w3": _pad2d(params["w3"], H, O, jnp.bfloat16),
        "s1": _pad2d(params["scale1"], 1, H, jnp.float32),
        "t1": _pad2d(params["shift1"], 1, H, jnp.float32),
        "s2": _pad2d(params["scale2"], 1, H, jnp.float32),
        "t2": _pad2d(params["shift2"], 1, H, jnp.float32),
        "b3": _pad2d(params["b3"], 1, O, jnp.float32),
        "input_dim": input_dim, "hidden_dim": hidden_dim, "output_dim": output_dim,
        "K": K, "H": H, "O": O, "tk": tk,
    }


def transcriptomics_nn_forward(x, prepared, *, batch_tile=512, allow_resident=True,
                               out_dtype=jnp.float32):
    """x: (B, input_dim) float32.  prepared: output of prepare_params (BN pre-folded)."""
    B, input_dim = x.shape
    if input_dim != prepared["input_dim"]:
        raise ValueError(f"x has {input_dim} features, params expect {prepared['input_dim']}")

    K, H, O, tk = prepared["K"], prepared["H"], prepared["O"], prepared["tk"]
    output_dim = prepared["output_dim"]
    w1, w2, w3 = prepared["w1"], prepared["w2"], prepared["w3"]
    s1, t1, s2, t2, b3 = (prepared["s1"], prepared["t1"], prepared["s2"],
                          prepared["t2"], prepared["b3"])

    vmem_budget = int(_vmem_budget_bytes())
    bt = _choose_batch_tile(B, batch_tile)
    Bp = _round_up(B, bt)
    out_isize = jnp.dtype(out_dtype).itemsize

    # Only per-call host work: pad/cast the activations.
    x_p = _pad2d(x, Bp, K, jnp.bfloat16)

    weight_mode = pl.Buffered(1) if _single_buffer_supported() else None

    # Weight-resident budget: single-buffered weights + double-buffered x/out tiles
    # + generous allowance for f32 intermediates / compiler scratch.
    resident_bytes = ((K * H + H * H + H * O) * 2 + (4 * H + O) * 4
                      + 2 * bt * K * 2 + 2 * bt * O * out_isize + 4 * bt * H * 4)
    use_resident = allow_resident and resident_bytes <= vmem_budget

    if use_resident:
        out_p = pl.pallas_call(
            _mlp_resident_kernel,
            out_shape=jax.ShapeDtypeStruct((Bp, O), out_dtype),
            grid_spec=pltpu.PrefetchScalarGridSpec(
                num_scalar_prefetch=0,
                grid=(Bp // bt,),
                in_specs=[
                    pl.BlockSpec((bt, K), lambda i: (i, 0)),          # x tile
                    _const_spec((K, H), 1, weight_mode),              # w1 (VMEM-resident)
                    _const_spec((1, H), 1, weight_mode),              # scale1
                    _const_spec((1, H), 1, weight_mode),              # shift1
                    _const_spec((H, H), 1, weight_mode),              # w2
                    _const_spec((1, H), 1, weight_mode),              # scale2
                    _const_spec((1, H), 1, weight_mode),              # shift2
                    _const_spec((H, O), 1, weight_mode),              # w3
                    _const_spec((1, O), 1, weight_mode),              # b3
                ],
                out_specs=pl.BlockSpec((bt, O), lambda i: (i, 0)),
            ),
            compiler_params=pltpu.CompilerParams(
                dimension_semantics=("parallel",),
                vmem_limit_bytes=vmem_budget),
        )(x_p, w1, s1, t1, w2, s2, t2, w3, b3)
    else:
        out_p = pl.pallas_call(
            _mlp_ktiled_kernel,
            out_shape=jax.ShapeDtypeStruct((Bp, O), out_dtype),
            grid_spec=pltpu.PrefetchScalarGridSpec(
                num_scalar_prefetch=0,
                grid=(Bp // bt, K // tk),
                in_specs=[
                    pl.BlockSpec((bt, tk), lambda i, k: (i, k)),      # x tile (M, K)
                    pl.BlockSpec((tk, H), lambda i, k: (k, 0)),       # w1 K-tile (streamed)
                    _const_spec((1, H), 2, weight_mode),              # scale1
                    _const_spec((1, H), 2, weight_mode),              # shift1
                    _const_spec((H, H), 2, weight_mode),              # w2
                    _const_spec((1, H), 2, weight_mode),              # scale2
                    _const_spec((1, H), 2, weight_mode),              # shift2
                    _const_spec((H, O), 2, weight_mode),              # w3
                    _const_spec((1, O), 2, weight_mode),              # b3
                ],
                out_specs=pl.BlockSpec((bt, O), lambda i, k: (i, 0)),
                scratch_shapes=[pltpu.VMEM((bt, H), jnp.float32)],    # fc1 f32 accumulator
            ),
            compiler_params=pltpu.CompilerParams(
                dimension_semantics=("parallel", "arbitrary"),
                vmem_limit_bytes=vmem_budget),
        )(x_p, w1, s1, t1, w2, s2, t2, w3, b3)

    return out_p[:B, :output_dim]


def make_forward(params, *, k_tile=1024, **fwd_kwargs):
    """Prepare (pad/cast) the weights once and return a jitted forward over x."""
    prepared = prepare_params(params, k_tile=k_tile)

    @jax.jit
    def fwd(x):
        return transcriptomics_nn_forward(x, prepared, **fwd_kwargs)

    return fwd


# ----------------------------------------------------------------------------- params / ref

def init_params(key, input_dim, hidden_dim, output_dim, eps=1e-5):
    """PyTorch-default-style init (U(-1/sqrt(fan_in), 1/sqrt(fan_in)) for Linear; BN gamma=1,
    beta=0, running_mean=0, running_var=1).  Inference BN folded into scale/shift."""
    ks = jax.random.split(key, 6)

    def linear(kw, kb, fan_in, fan_out):
        bound = 1.0 / jnp.sqrt(jnp.float32(fan_in))
        w = jax.random.uniform(kw, (fan_in, fan_out), jnp.float32, -bound, bound)
        b = jax.random.uniform(kb, (fan_out,), jnp.float32, -bound, bound)
        return w, b

    w1, b1 = linear(ks[0], ks[1], input_dim, hidden_dim)
    w2, b2 = linear(ks[2], ks[3], hidden_dim, hidden_dim)
    w3, b3 = linear(ks[4], ks[5], hidden_dim, output_dim)

    gamma = jnp.ones((hidden_dim,), jnp.float32)
    beta = jnp.zeros((hidden_dim,), jnp.float32)
    rm = jnp.zeros((hidden_dim,), jnp.float32)
    rv = jnp.ones((hidden_dim,), jnp.float32)

    # BN(z) = gamma*(z-rm)/sqrt(rv+eps) + beta, with z = x@W + b  ->  (x@W)*scale + shift
    scale1 = gamma / jnp.sqrt(rv + eps)
    shift1 = (b1 - rm) * scale1 + beta
    scale2 = gamma / jnp.sqrt(rv + eps)
    shift2 = (b2 - rm) * scale2 + beta

    return {
        "w1": w1, "w2": w2, "w3": w3,
        "scale1": scale1.reshape(1, -1), "shift1": shift1.reshape(1, -1),
        "scale2": scale2.reshape(1, -1), "shift2": shift2.reshape(1, -1),
        "b3": b3.reshape(1, -1),
    }


def reference_forward(x, params):
    """Pure-JAX reference with the same bf16-matmul / f32-accumulate numerics as the kernel."""
    w1 = params["w1"].astype(jnp.bfloat16)
    w2 = params["w2"].astype(jnp.bfloat16)
    w3 = params["w3"].astype(jnp.bfloat16)
    h = jnp.dot(x.astype(jnp.bfloat16), w1, preferred_element_type=jnp.float32)
    h = jnp.maximum(h * params["scale1"] + params["shift1"], 0.0)
    h = jnp.dot(h.astype(jnp.bfloat16), w2, preferred_element_type=jnp.float32)
    h = jnp.maximum(h * params["scale2"] + params["shift2"], 0.0)
    return jnp.dot(h.astype(jnp.bfloat16), w3,
                   preferred_element_type=jnp.float32) + params["b3"]


# ----------------------------------------------------------------------------- demo / test

if __name__ == "__main__":
    key = jax.random.PRNGKey(0)
    k_x, k_p, k_x2, k_p2 = jax.random.split(key, 4)

    # Small config -> weight-resident path (grid over batch only).
    B, input_dim, hidden_dim, output_dim = 16, 64, 32, 8
    params = init_params(k_p, input_dim, hidden_dim, output_dim)
    x = jax.random.normal(k_x, (B, input_dim), jnp.float32)

    fwd = make_forward(params)          # weights padded/cast exactly once, wrapper jitted
    out = jax.block_until_ready(fwd(x))
    ref = reference_forward(x, params)
    assert out.shape == (B, output_dim)
    assert jnp.allclose(out, ref, atol=1e-2, rtol=1e-2), "mismatch vs reference"

    # Ragged batch (not a multiple of the tile) exercises the pad-and-slice path.
    out2 = jax.block_until_ready(fwd(x[:10]))
    assert out2.shape == (10, output_dim)
    assert jnp.allclose(out2, ref[:10], atol=1e-2, rtol=1e-2), "mismatch vs reference (ragged)"

    # K-tiled accumulator fallback: multiple K tiles, multiple batch tiles, ragged batch.
    B2, in2, hid2, out_dim2 = 40, 300, 48, 10
    params2 = init_params(k_p2, in2, hid2, out_dim2)
    x2 = jax.random.normal(k_x2, (B2, in2), jnp.float32)
    prepared2 = prepare_params(params2, k_tile=128)          # K=384 -> 3 K-steps
    out3 = jax.block_until_ready(
        transcriptomics_nn_forward(x2, prepared2, allow_resident=False))
    ref3 = reference_forward(x2, params2)
    assert out3.shape == (B2, out_dim2)
    assert jnp.allclose(out3, ref3, atol=1e-2, rtol=1e-2), "mismatch vs reference (k-tiled)"

    print("KERNEL_OK")
</pallas_src>

<mosaic_0001>
module attributes {stable_mosaic.version = 11 : i64} {
  func.func @_mlp_resident_kernel(%arg0: i32, %arg1: memref<16x128xbf16, #tpu.memory_space<vmem>>, %arg2: memref<128x128xbf16, #tpu.memory_space<vmem>>, %arg3: memref<1x128xf32, #tpu.memory_space<vmem>>, %arg4: memref<1x128xf32, #tpu.memory_space<vmem>>, %arg5: memref<128x128xbf16, #tpu.memory_space<vmem>>, %arg6: memref<1x128xf32, #tpu.memory_space<vmem>>, %arg7: memref<1x128xf32, #tpu.memory_space<vmem>>, %arg8: memref<128x128xbf16, #tpu.memory_space<vmem>>, %arg9: memref<1x128xf32, #tpu.memory_space<vmem>>, %arg10: memref<16x128xf32, #tpu.memory_space<vmem>>) attributes {dimension_semantics = [#tpu.dimension_semantics<parallel>], iteration_bounds = array<i64: 1>, scalar_prefetch = 0 : i64, scratch_operands = 0 : i64, tpu.core_type = #tpu.core_type<tc>, window_params = [{transform_indices = @transform_0, window_bounds = array<i64: 16, 128>}, {pipeline_mode = #tpu.pipeline_mode<synchronous>, transform_indices = @transform_1, window_bounds = array<i64: 128, 128>}, {pipeline_mode = #tpu.pipeline_mode<synchronous>, transform_indices = @transform_2, window_bounds = array<i64: 1, 128>}, {pipeline_mode = #tpu.pipeline_mode<synchronous>, transform_indices = @transform_3, window_bounds = array<i64: 1, 128>}, {pipeline_mode = #tpu.pipeline_mode<synchronous>, transform_indices = @transform_4, window_bounds = array<i64: 128, 128>}, {pipeline_mode = #tpu.pipeline_mode<synchronous>, transform_indices = @transform_5, window_bounds = array<i64: 1, 128>}, {pipeline_mode = #tpu.pipeline_mode<synchronous>, transform_indices = @transform_6, window_bounds = array<i64: 1, 128>}, {pipeline_mode = #tpu.pipeline_mode<synchronous>, transform_indices = @transform_7, window_bounds = array<i64: 128, 128>}, {pipeline_mode = #tpu.pipeline_mode<synchronous>, transform_indices = @transform_8, window_bounds = array<i64: 1, 128>}, {transform_indices = @transform_9, window_bounds = array<i64: 16, 128>}]} {
    %c0 = arith.constant 0 : index
    %c0_0 = arith.constant 0 : index
    %0 = vector.load %arg1[%c0, %c0_0] : memref<16x128xbf16, #tpu.memory_space<vmem>>, vector<16x128xbf16>
    %c0_1 = arith.constant 0 : index
    %c0_2 = arith.constant 0 : index
    %1 = vector.load %arg2[%c0_1, %c0_2] : memref<128x128xbf16, #tpu.memory_space<vmem>>, vector<128x128xbf16>
    %cst = arith.constant dense<0.000000e+00> : vector<16x128xf32>
    %2 = tpu.matmul %0, %1, %cst {dimension_numbers = #tpu.dot_dimension_numbers<[1], [0], [0], [1], [0, 0, 1, 1], [], []>} : vector<16x128xbf16>, vector<128x128xbf16>, vector<16x128xf32> -> vector<16x128xf32>
    %c0_3 = arith.constant 0 : index
    %c0_4 = arith.constant 0 : index
    %3 = vector.load %arg3[%c0_3, %c0_4] : memref<1x128xf32, #tpu.memory_space<vmem>>, vector<1x128xf32>
    %4 = vector.broadcast %3 : vector<1x128xf32> to vector<16x128xf32>
    %5 = arith.mulf %2, %4 : vector<16x128xf32>
    %c0_5 = arith.constant 0 : index
    %c0_6 = arith.constant 0 : index
    %6 = vector.load %arg4[%c0_5, %c0_6] : memref<1x128xf32, #tpu.memory_space<vmem>>, vector<1x128xf32>
    %7 = vector.broadcast %6 : vector<1x128xf32> to vector<16x128xf32>
    %8 = arith.addf %5, %7 : vector<16x128xf32>
    %cst_7 = arith.constant 0.000000e+00 : f32
    %9 = vector.broadcast %cst_7 : f32 to vector<16x128xf32>
    %10 = arith.maximumf %8, %9 : vector<16x128xf32>
    %11 = arith.truncf %10 : vector<16x128xf32> to vector<16x128xbf16>
    %c0_8 = arith.constant 0 : index
    %c0_9 = arith.constant 0 : index
    %12 = vector.load %arg5[%c0_8, %c0_9] : memref<128x128xbf16, #tpu.memory_space<vmem>>, vector<128x128xbf16>
    %cst_10 = arith.constant dense<0.000000e+00> : vector<16x128xf32>
    %13 = tpu.matmul %11, %12, %cst_10 {dimension_numbers = #tpu.dot_dimension_numbers<[1], [0], [0], [1], [0, 0, 1, 1], [], []>} : vector<16x128xbf16>, vector<128x128xbf16>, vector<16x128xf32> -> vector<16x128xf32>
    %c0_11 = arith.constant 0 : index
    %c0_12 = arith.constant 0 : index
    %14 = vector.load %arg6[%c0_11, %c0_12] : memref<1x128xf32, #tpu.memory_space<vmem>>, vector<1x128xf32>
    %15 = vector.broadcast %14 : vector<1x128xf32> to vector<16x128xf32>
    %16 = arith.mulf %13, %15 : vector<16x128xf32>
    %c0_13 = arith.constant 0 : index
    %c0_14 = arith.constant 0 : index
    %17 = vector.load %arg7[%c0_13, %c0_14] : memref<1x128xf32, #tpu.memory_space<vmem>>, vector<1x128xf32>
    %18 = vector.broadcast %17 : vector<1x128xf32> to vector<16x128xf32>
    %19 = arith.addf %16, %18 : vector<16x128xf32>
    %cst_15 = arith.constant 0.000000e+00 : f32
    %20 = vector.broadcast %cst_15 : f32 to vector<16x128xf32>
    %21 = arith.maximumf %19, %20 : vector<16x128xf32>
    %22 = arith.truncf %21 : vector<16x128xf32> to vector<16x128xbf16>
    %c0_16 = arith.constant 0 : index
    %c0_17 = arith.constant 0 : index
    %23 = vector.load %arg8[%c0_16, %c0_17] : memref<128x128xbf16, #tpu.memory_space<vmem>>, vector<128x128xbf16>
    %cst_18 = arith.constant dense<0.000000e+00> : vector<16x128xf32>
    %24 = tpu.matmul %22, %23, %cst_18 {dimension_numbers = #tpu.dot_dimension_numbers<[1], [0], [0], [1], [0, 0, 1, 1], [], []>} : vector<16x128xbf16>, vector<128x128xbf16>, vector<16x128xf32> -> vector<16x128xf32>
    %c0_19 = arith.constant 0 : index
    %c0_20 = arith.constant 0 : index
    %25 = vector.load %arg9[%c0_19, %c0_20] : memref<1x128xf32, #tpu.memory_space<vmem>>, vector<1x128xf32>
    %26 = vector.broadcast %25 : vector<1x128xf32> to vector<16x128xf32>
    %27 = arith.addf %24, %26 : vector<16x128xf32>
    %c0_21 = arith.constant 0 : index
    %c0_22 = arith.constant 0 : index
    %28 = vector.load %arg10[%c0_21, %c0_22] : memref<16x128xf32, #tpu.memory_space<vmem>>, vector<16x128xf32>
    tpu.vector_store %arg10[%c0_21, %c0_22], %27 {strides = array<i32>} : memref<16x128xf32, #tpu.memory_space<vmem>>, vector<16x128xf32>,
    return
  }
  func.func @transform_0(%arg0: i32) -> (i32, i32) {
    %c0_i32 = arith.constant 0 : i32
    %c0_i32_0 = arith.constant 0 : i32
    return %arg0, %c0_i32 : i32, i32
  }
  func.func @transform_1(%arg0: i32) -> (i32, i32) {
    %c0_i32 = arith.constant 0 : i32
    %c0_i32_0 = arith.constant 0 : i32
    %c0_i32_1 = arith.constant 0 : i32
    return %c0_i32, %c0_i32_0 : i32, i32
  }
  func.func @transform_2(%arg0: i32) -> (i32, i32) {
    %c0_i32 = arith.constant 0 : i32
    %c0_i32_0 = arith.constant 0 : i32
    %c0_i32_1 = arith.constant 0 : i32
    return %c0_i32, %c0_i32_0 : i32, i32
  }
  func.func @transform_3(%arg0: i32) -> (i32, i32) {
    %c0_i32 = arith.constant 0 : i32
    %c0_i32_0 = arith.constant 0 : i32
    %c0_i32_1 = arith.constant 0 : i32
    return %c0_i32, %c0_i32_0 : i32, i32
  }
  func.func @transform_4(%arg0: i32) -> (i32, i32) {
    %c0_i32 = arith.constant 0 : i32
    %c0_i32_0 = arith.constant 0 : i32
    %c0_i32_1 = arith.constant 0 : i32
    return %c0_i32, %c0_i32_0 : i32, i32
  }
  func.func @transform_5(%arg0: i32) -> (i32, i32) {
    %c0_i32 = arith.constant 0 : i32
    %c0_i32_0 = arith.constant 0 : i32
    %c0_i32_1 = arith.constant 0 : i32
    return %c0_i32, %c0_i32_0 : i32, i32
  }
  func.func @transform_6(%arg0: i32) -> (i32, i32) {
    %c0_i32 = arith.constant 0 : i32
    %c0_i32_0 = arith.constant 0 : i32
    %c0_i32_1 = arith.constant 0 : i32
    return %c0_i32, %c0_i32_0 : i32, i32
  }
  func.func @transform_7(%arg0: i32) -> (i32, i32) {
    %c0_i32 = arith.constant 0 : i32
    %c0_i32_0 = arith.constant 0 : i32
    %c0_i32_1 = arith.constant 0 : i32
    return %c0_i32, %c0_i32_0 : i32, i32
  }
  func.func @transform_8(%arg0: i32) -> (i32, i32) {
    %c0_i32 = arith.constant 0 : i32
    %c0_i32_0 = arith.constant 0 : i32
    %c0_i32_1 = arith.constant 0 : i32
    return %c0_i32, %c0_i32_0 : i32, i32
  }
  func.func @transform_9(%arg0: i32) -> (i32, i32) {
    %c0_i32 = arith.constant 0 : i32
    %c0_i32_0 = arith.constant 0 : i32
    return %arg0, %c0_i32 : i32, i32
  }
}

</mosaic_0001>

<bundles_post_ra>
// kernel: fwd.1
= control target key start
LH: loop header
LB: loop body
LE: loop exit
PB: predicated region body
PF: predicated region fallthrough
CT: control target
= control target key end

     0   :  { %14 = vsyncpa [#allocation3], 0  ;;  %s787_s0 = inlined_call_operand.vmem [shape: bf16[16,128], index: 0, kind: input, shape index: {}]   ;;  %s788_s1 = inlined_call_operand.hbm [shape: bf16[128,128], index: 1, kind: input, shape index: {}]   ;;  %s789_s2 = inlined_call_operand.vmem [shape: f32[1,128], index: 2, kind: input, shape index: {}, may-alias: {2,5}]   ;;  %s790_s3 = inlined_call_operand.vmem [shape: f32[1,128], index: 3, kind: input, shape index: {}]   ;;  %s791_s4 = inlined_call_operand.hbm [shape: bf16[128,128], index: 4, kind: input, shape index: {}]   ;;  %s792_s5 = inlined_call_operand.vmem [shape: f32[1,128], index: 5, kind: input, shape index: {}, may-alias: {2,5}]   ;;  %s793_s6 = inlined_call_operand.vmem [shape: f32[1,128], index: 6, kind: input, shape index: {}]   ;;  %s794_s7 = inlined_call_operand.hbm [shape: bf16[128,128], index: 7, kind: input, shape index: {}]   ;;  %s795_s8 = inlined_call_operand.vmem [shape: f32[1,128], index: 8, kind: input, shape index: {}]   ;;  %s796_s9 = inlined_call_operand.vmem [shape: f32[16,128], index: 9, kind: output, shape index: {}]  }
   0x1   :  { %15 = vsyncpa [#allocation5], 0  ;;  %s667_s30 = smov [#allocation4]   ;;  %s668_s11 = smov [#allocation2]  }
   0x2   :  { %s39_s10 = sshll.u32 %s667_s30, 4  ;;  %s23_s12 = sshll.u32 %s668_s11, 4  ;;  %s40_s10 = int_to_ptr.vmem [resolvable:$true] %s39_s10  ;;  %s24_s12 = int_to_ptr.vmem [resolvable:$true] %s23_s12 }
   0x3   :  { %s611_s13 = scalar_lea.vmem %s40_s10, 1024  ;;  %p616_p1 = scmp.lt.s32.totalorder %s40_s10, %s40_s10 }
   0x4   :  { %p612_p0 = scmp.ne.s32.totalorder %s40_s10, %s611_s13  ;;  %p617_p2 = scmp.lt.s32.totalorder %s611_s13, %s611_s13 }
   0x6   :  { %p618_p3 = por %p617_p2, %p616_p1 }
   0x8   :  { %p619_p4 = pnand %p618_p3, %p612_p0 }
   0xa   :  { %622 = shalt.err (!%p619_p4)
}
   0xb   :  { %s669_s14 = smov 64   ;;  %s670_s15 = smov 4  }
   0xc   :  { %45 = dma.hbm_to_vmem [thread:$0]  %s791_s4, 1024, %s40_s10, [#allocation5], %s669_s14, %s669_s14, %s670_s15  }
   0xd   :  { %s631_s18 = scalar_lea.vmem %s24_s12, 1024  ;;  %p636_p6 = scmp.lt.s32.totalorder %s24_s12, %s24_s12 }
   0xe   :  { %p632_p5 = scmp.ne.s32.totalorder %s24_s12, %s631_s18  ;;  %p637_p7 = scmp.lt.s32.totalorder %s631_s18, %s631_s18 }
  0x10   :  { %p638_p8 = por %p637_p7, %p636_p6 }
  0x12   :  { %p639_p9 = pnand %p638_p8, %p632_p5 }
  0x14   :  { %642 = shalt.err (!%p639_p9)
}
  0x15   :  { %29 = dma.hbm_to_vmem [thread:$0]  %s788_s1, 1024, %s24_s12, [#allocation3], %s669_s14, %s669_s14, %s670_s15  }
  0x16   :  { %s671_s21 = smov [#allocation6]  }
  0x17   :  { %s55_s22 = sshll.u32 %s671_s21, 4  ;;  %s56_s22 = int_to_ptr.vmem [resolvable:$true] %s55_s22 }
  0x18   :  { %s651_s23 = scalar_lea.vmem %s56_s22, 1024  ;;  %p656_p11 = scmp.lt.s32.totalorder %s56_s22, %s56_s22 }
  0x19   :  { %p652_p10 = scmp.ne.s32.totalorder %s56_s22, %s651_s23  ;;  %p657_p12 = scmp.lt.s32.totalorder %s651_s23, %s651_s23 }
  0x1b   :  { %p658_p13 = por %p657_p12, %p656_p11 }
  0x1d   :  { %p659_p0 = pnand %p658_p13, %p652_p10 }
  0x1f   :  { %662 = shalt.err (!%p659_p0)
}
  0x20   :  { %61 = dma.hbm_to_vmem [thread:$0]  %s794_s7, 1024, %s56_s22, [#allocation5], %s669_s14, %s669_s14, %s670_s15  }
  0x21   :  { %663 = dma.done.wait [#allocation3], 1024  }
  0x22   :  { %664 = vsyncadd [#allocation3], 4294966272 }
  0x23   :  { %665 = dma.done.wait [#allocation5], 2048  }
  0x24   :  { %666 = vsyncadd [#allocation5], 4294965248  ;;  %v672_v0 = vmov 0.0   ;;  %vm673_vm0 = vmmov 0   ;;  %v578_v1 = vld [vmem:[#allocation2 + $0x38] sm:$0xff]   ;;  %v579_v2 = vld [vmem:[#allocation2 + $0x30] sm:$0xff]  }
  0x25   :  { %511 = vmatprep.subr.bf16.mxu0 %v672_v0  ;;  %527 = vmatprep.mubr.msk.bf16.mxu0 %vm673_vm0, %v672_v0  ;;  %v580_v3 = vld [vmem:[#allocation2 + $0x28] sm:$0xff]   ;;  %v587_v4 = vld [vmem:[#allocation4 + $0x38] sm:$0xff]   ;;  %v581_v5 = vld [vmem:[#allocation2 + $0x20] sm:$0xff]  }
  0x26   :  { %531 = vmatprep.subr.bf16.mxu1 %v672_v0  ;;  %547 = vmatprep.mubr.msk.bf16.mxu1 %vm673_vm0, %v672_v0  ;;  %v588_v6 = vld [vmem:[#allocation4 + $0x30] sm:$0xff]   ;;  %v582_v7 = vld [vmem:[#allocation2 + $0x18] sm:$0xff]   ;;  %v589_v8 = vld [vmem:[#allocation4 + $0x28] sm:$0xff]  }
  0x27   :  { %512 = vmatpush3.bf16.msra.mxu0 %v578_v1  ;;  %532 = vmatpush3.bf16.msra.mxu1 %v587_v4  ;;  %v583_v9 = vld [vmem:[#allocation2 + $0x10] sm:$0xff]   ;;  %v590_v10 = vld [vmem:[#allocation4 + $0x20] sm:$0xff]   ;;  %v584_v11 = vld [vmem:[#allocation2 + $0x8] sm:$0xff]  }
  0x28   :  { %513 = vmatprep.subr.bf16.mxu0 %v672_v0  ;;  %533 = vmatprep.subr.bf16.mxu1 %v672_v0  ;;  %v591_v12 = vld [vmem:[#allocation4 + $0x18] sm:$0xff]   ;;  %v585_v13 = vld [vmem:[#allocation2] sm:$0xff]   ;;  %v592_v15 = vld [vmem:[#allocation4 + $0x10] sm:$0xff]  }
  0x29   :  { %v586_v14 = vld [vmem:[%s787_s0] sm:$0xff]   ;;  %v593_v16 = vld [vmem:[#allocation4 + $0x8] sm:$0xff]   ;;  %v595_v18 = vld [vmem:[#allocation6 + $0x38] sm:$0xff]  }
  0x2a   :  { %v594_v17 = vld [vmem:[#allocation4] sm:$0xff]   ;;  %v596_v19 = vld [vmem:[#allocation6 + $0x30] sm:$0xff]   ;;  %v597_v20 = vld [vmem:[#allocation6 + $0x28] sm:$0xff]  }
  0x2b   :  { %514 = vmatpush3.bf16.msra.mxu0 %v579_v2  ;;  %534 = vmatpush3.bf16.msra.mxu1 %v588_v6  ;;  %v598_v21 = vld [vmem:[#allocation6 + $0x20] sm:$0xff]   ;;  %v599_v22 = vld [vmem:[#allocation6 + $0x18] sm:$0xff]   ;;  %v600_v36 = vld [vmem:[#allocation6 + $0x10] sm:$0xff]  }
  0x2c   :  { %515 = vmatprep.subr.bf16.mxu0 %v672_v0  ;;  %535 = vmatprep.subr.bf16.mxu1 %v672_v0  ;;  %v463_v23 = vld [vmem:[%s789_s2] ss:$0 sm:$0xff]  ;;  %v601_v37 = vld [vmem:[#allocation6 + $0x8] sm:$0xff]  }
  0x2d   :  { %v464_v26 = vld [vmem:[%s790_s3] ss:$0 sm:$0xff] }
  0x2e   :  { %v602_v38 = vld [vmem:[#allocation6] sm:$0xff]  }
  0x2f   :  { %516 = vmatpush3.bf16.msra.mxu0 %v580_v3  ;;  %536 = vmatpush3.bf16.msra.mxu1 %v589_v8  ;;  %v473_v39 = vld [vmem:[%s792_s5] ss:$0 sm:$0xff] }
  0x30   :  { %517 = vmatprep.subr.bf16.mxu0 %v672_v0  ;;  %537 = vmatprep.subr.bf16.mxu1 %v672_v0  ;;  %v474_v42 = vld [vmem:[%s793_s6] ss:$0 sm:$0xff] }
  0x31   :  { %v475_v52 = vld [vmem:[%s795_s8] ss:$0 sm:$0xff] }
  0x33   :  { %518 = vmatpush3.bf16.msra.mxu0 %v581_v5  ;;  %538 = vmatpush3.bf16.msra.mxu1 %v590_v10 }
  0x34   :  { %519 = vmatprep.subr.bf16.mxu0 %v672_v0  ;;  %539 = vmatprep.subr.bf16.mxu1 %v672_v0 }
  0x37   :  { %520 = vmatpush3.bf16.msra.mxu0 %v582_v7  ;;  %540 = vmatpush3.bf16.msra.mxu1 %v591_v12 }
  0x38   :  { %521 = vmatprep.subr.bf16.mxu0 %v672_v0  ;;  %541 = vmatprep.subr.bf16.mxu1 %v672_v0 }
  0x3b   :  { %522 = vmatpush3.bf16.msra.mxu0 %v583_v9  ;;  %542 = vmatpush3.bf16.msra.mxu1 %v592_v15 }
  0x3c   :  { %523 = vmatprep.subr.bf16.mxu0 %v672_v0  ;;  %543 = vmatprep.subr.bf16.mxu1 %v672_v0 }
  0x3f   :  { %524 = vmatpush3.bf16.msra.mxu0 %v584_v11  ;;  %544 = vmatpush3.bf16.msra.mxu1 %v593_v16 }
  0x40   :  { %525 = vmatprep.subr.bf16.mxu0 %v672_v0  ;;  %545 = vmatprep.subr.bf16.mxu1 %v672_v0 }
  0x43   :  { %526 = vmatpush3.bf16.msra.mxu0 %v585_v13  ;;  %546 = vmatpush3.bf16.msra.mxu1 %v594_v17 }
  0x44   :  { %551 = vmatprep.subr.bf16.mxu0 %v672_v0 }
  0x46   :  { %528 = vmatmul.mubr.bf16.vlgmr.msra.gmra.mxu0 %v586_v14 }
  0x47   :  { %567 = vmatprep.mubr.msk.bf16.mxu0 %vm673_vm0, %v672_v0  ;;  %552 = vmatpush3.bf16.msra.mxu0 %v595_v18 }
  0x48   :  { %553 = vmatprep.subr.bf16.mxu0 %v672_v0 }
  0x4b   :  { %554 = vmatpush3.bf16.msra.mxu0 %v596_v19 }
  0x4c   :  { %555 = vmatprep.subr.bf16.mxu0 %v672_v0 }
  0x4f   :  { %556 = vmatpush3.bf16.msra.mxu0 %v597_v20 }
  0x50   :  { %557 = vmatprep.subr.bf16.mxu0 %v672_v0 }
  0x53   :  { %558 = vmatpush3.bf16.msra.mxu0 %v598_v21 }
  0x54   :  { %559 = vmatprep.subr.bf16.mxu0 %v672_v0 }
  0x57   :  { %560 = vmatpush3.bf16.msra.mxu0 %v599_v22 }
  0x58   :  { %561 = vmatprep.subr.bf16.mxu0 %v672_v0 }
  0x5b   :  { %562 = vmatpush3.bf16.msra.mxu0 %v600_v36 }
  0x5c   :  { %563 = vmatprep.subr.bf16.mxu0 %v672_v0 }
  0x5f   :  { %564 = vmatpush3.bf16.msra.mxu0 %v601_v37 }
  0x60   :  { %565 = vmatprep.subr.bf16.mxu0 %v672_v0 }
  0x63   :  { %566 = vmatpush3.bf16.msra.mxu0 %v602_v38 }
 0x106   :  { %v180_v24 = vpop.f32.mrf.mxu0 }
 0x107   :  { %v194_v25 = vmul.f32 %v463_v23, %v180_v24 }
 0x108   :  { %v529_v27 = vpop.f32.mrf.mxu0 }
 0x109   :  { %v203_v29 = vadd.f32 %v464_v26, %v194_v25 }
 0x10a   :  { %v183_v28 = vpop.f32.mrf.mxu0 }
 0x10b   :  { %v195_v30 = vmul.f32 %v463_v23, %v183_v28  ;;  %v205_v33 = vmax.f32 %v203_v29, 0.0 }
 0x10c   :  { %v530_v31 = vpop.f32.mrf.mxu0 }
 0x10d   :  { %v204_v32 = vadd.f32 %v464_v26, %v195_v30 }
 0x10f   :  { %v206_v34 = vmax.f32 %v204_v32, 0.0 }
 0x111   :  { %v207_v35 = vpack.c.bf16 %v206_v34, %v205_v33 }
 0x113   :  { %548 = vmatmul.mubr.bf16.vlgmr.msra.gmra.mxu1 %v207_v35 }
 0x1d3   :  { %v306_v40 = vpop.f32.mrf.mxu1 }
 0x1d4   :  { %v320_v41 = vmul.f32 %v473_v39, %v306_v40 }
 0x1d5   :  { %v549_v43 = vpop.f32.mrf.mxu1 }
 0x1d6   :  { %v329_v45 = vadd.f32 %v474_v42, %v320_v41 }
 0x1d7   :  { %v309_v44 = vpop.f32.mrf.mxu1 }
 0x1d8   :  { %v321_v46 = vmul.f32 %v473_v39, %v309_v44  ;;  %v331_v49 = vmax.f32 %v329_v45, 0.0 }
 0x1d9   :  { %v550_v47 = vpop.f32.mrf.mxu1 }
 0x1da   :  { %v330_v48 = vadd.f32 %v474_v42, %v321_v46 }
 0x1dc   :  { %v332_v50 = vmax.f32 %v330_v48, 0.0 }
 0x1de   :  { %v333_v51 = vpack.c.bf16 %v332_v50, %v331_v49 }
 0x1e0   :  { %568 = vmatmul.mubr.bf16.vlgmr.msra.gmra.mxu0 %v333_v51 }
 0x2a0   :  { %v439_v53 = vpop.f32.mrf.mxu0 }
 0x2a1   :  { %v440_v54 = vadd.f32 %v475_v52, %v439_v53 }
 0x2a2   :  { %v569_v55 = vpop.f32.mrf.mxu0 }
 0x2a3   :  { %446 = vst [vmem:[%s796_s9] sm:$0xff] %v440_v54 }
 0x2a4   :  { %v442_v56 = vpop.f32.mrf.mxu0 }
 0x2a5   :  { %v443_v57 = vadd.f32 %v475_v52, %v442_v56 }
 0x2a6   :  { %v570_v58 = vpop.f32.mrf.mxu0 }
 0x2a7   :  { %447 = vst [vmem:[%s796_s9 + $0x8] sm:$0xff] %v443_v57 }
 0x2a8   :  { %452 = vsyncpa [#allocation3], 1 }
 0x2a9   :  { %453 = vsyncpa [#allocation5], 1 }

</bundles_post_ra>
